<compile_context>
chip_gen: v7x
topology: tpu7x:2x2x1
jax: 0.10.0
libtpu: 0.0.40
codegen_flags: <defaults>
</compile_context>

<pallas_src>
import functools
import math

import jax
import jax.numpy as jnp
from jax import lax
from jax.experimental import pallas as pl
from jax.experimental.pallas import tpu as pltpu


def _vmem_limit() -> int:
    """Scoped-VMEM budget: ~3/4 of physical, capped at 100 MiB.

    v5e/v6e have 128 MiB per core (-> 96 MiB), v7x only 64 MiB (-> 48 MiB)."""
    try:
        cap = int(pltpu.get_tpu_info().vmem_capacity_bytes)
    except Exception:
        cap = 64 * 1024 * 1024
    return min((cap * 3) // 4, 100 * 1024 * 1024)


def _pick_tile(n: int, pref: int, mult: int = 16) -> int:
    """Largest tile <= pref dividing n and a multiple of `mult`, else n itself."""
    if n <= pref:
        return n
    for t in range(pref, mult - 1, -1):
        if n % t == 0 and t % mult == 0:
            return t
    return n


def _pick_weight_tile(E: int, vmem_limit: int) -> int:
    """Column tile for the fused (E, 3E) bf16 QKV weight (VMEM headroom on v7x)."""
    full = 3 * E
    budget = vmem_limit // 2
    if 4 * E * full <= budget or E % 128 != 0:   # 2 bytes * 2 buffers
        return full
    tn = E
    while tn > 128 and 4 * E * tn > budget:
        nxt = tn // 2
        if nxt % 128 != 0 or full % nxt != 0:
            break
        tn = nxt
    return tn


# ---------------------------------------------------------------------------
# Kernel 1: fused QKV projection (scale folded into the Q weight columns).
# ---------------------------------------------------------------------------
def _qkv_kernel(x_ref, w_ref, y_ref):
    x = x_ref[0].astype(w_ref.dtype)                                # (ts, E) bf16
    y_ref[0] = jnp.dot(x, w_ref[...],
                       preferred_element_type=jnp.float32).astype(y_ref.dtype)


def _project_qkv(x, w_fused, ts, tn, vmem_limit):
    B, S, E = x.shape
    three_e = w_fused.shape[1]
    nb = three_e // tn
    return pl.pallas_call(
        _qkv_kernel,
        out_shape=jax.ShapeDtypeStruct((B, S, three_e), jnp.bfloat16),
        # Weight-column axis outermost: each weight block is DMA'd exactly once.
        grid=(nb, B, S // ts),
        in_specs=[
            pl.BlockSpec((1, ts, E), lambda n, b, s: (b, s, 0)),     # x rows
            pl.BlockSpec((E, tn), lambda n, b, s: (0, n)),           # fused W cols
        ],
        out_specs=pl.BlockSpec((1, ts, tn), lambda n, b, s: (b, s, n)),
        compiler_params=pltpu.CompilerParams(
            dimension_semantics=("parallel", "parallel", "parallel"),
            vmem_limit_bytes=vmem_limit),
        cost_estimate=pl.CostEstimate(
            flops=2 * B * S * E * three_e,
            transcendentals=0,
            bytes_accessed=nb * 4 * B * S * E + 2 * E * three_e
            + 2 * B * S * three_e),
    )(x, w_fused)


# ---------------------------------------------------------------------------
# Kernel 2: flash-style dilated attention + fused output projection.
# Grid: (batch, query-tile, head, key-tile).
# ---------------------------------------------------------------------------
def _attn_kernel(span, dilation, use_mask,
                 q_ref, k_ref, v_ref, wo_ref, bo_ref, o_ref,
                 m_sc, l_sc, acc_sc):
    qi = pl.program_id(1)
    h = pl.program_id(2)
    ki = pl.program_id(3)
    nh = pl.num_programs(2)
    nk = pl.num_programs(3)

    tq, D = q_ref.shape[2], q_ref.shape[3]
    tk = k_ref.shape[2]

    # Output block is VMEM-resident across the (h, ki) reduction axes: zero it
    # once and accumulate the per-head projected context directly into it.
    @pl.when(jnp.logical_and(h == 0, ki == 0))
    def _():
        o_ref[...] = jnp.zeros_like(o_ref)

    @pl.when(ki == 0)
    def _():
        m_sc[...] = jnp.full_like(m_sc, -jnp.inf)
        l_sc[...] = jnp.zeros_like(l_sc)
        acc_sc[...] = jnp.zeros_like(acc_sc)

    q = q_ref[0, 0]                                  # (tq, D) bf16, pre-scaled
    k = k_ref[0, 0]                                  # (tk, D) bf16
    v = v_ref[0, 0]                                  # (tk, D) bf16

    # scores (tq, tk) = q @ k^T on the MXU (contract last dims, f32 accumulate).
    s = lax.dot_general(q, k, (((1,), (1,)), ((), ())),
                        preferred_element_type=jnp.float32)

    if use_mask:
        # Exact dilation mask from global positions (ragged case only):
        #   keep(i, j) = (j >= lo) & (j <= i + span) & ((j - lo) % d == 0),
        #   lo = max(0, i - span), span = d * (S // d).  (j < S is automatic.)
        row = qi * tq + lax.broadcasted_iota(jnp.int32, (tq, 1), 0)
        col = ki * tk + lax.broadcasted_iota(jnp.int32, (1, tk), 1)
        lo = jnp.maximum(row - span, 0)
        keep = (col >= lo) & (col <= row + span) & (((col - lo) % dilation) == 0)
        s = jnp.where(keep, s, -1e30)

    # Online softmax update.
    m_prev = m_sc[...]
    m_new = jnp.maximum(m_prev, jnp.max(s, axis=-1, keepdims=True))
    alpha = jnp.exp(m_prev - m_new)
    p = jnp.exp(s - m_new)
    if use_mask:
        # Load-bearing re-mask: if every key seen so far is masked, m_new is
        # -1e30 and exp(s - m_new) == 1 for masked entries.
        p = jnp.where(keep, p, 0.0)

    l_sc[...] = alpha * l_sc[...] + jnp.sum(p, axis=-1, keepdims=True)
    acc_sc[...] = alpha * acc_sc[...] + jnp.dot(
        p.astype(v.dtype), v, preferred_element_type=jnp.float32)
    m_sc[...] = m_new

    # Finished all key tiles for this head: normalize exactly and fold the
    # per-head context straight into the output-projection accumulator.  Wo is
    # a single resident (E, E) block; take head h's D rows with a dynamic
    # sublane slice (every query row has >= 1 valid key, so l > 0).
    @pl.when(ki == nk - 1)
    def _():
        ctx = acc_sc[...] * (1.0 / l_sc[...])                      # (tq, D) f32
        w_start = pl.multiple_of(h * D, 8)
        w_h = wo_ref[pl.ds(w_start, D), :]                         # (D, E) bf16
        o_ref[0] += jnp.dot(ctx.astype(w_h.dtype), w_h,
                            preferred_element_type=jnp.float32)

    # Last head, last key tile: add the bias; the (tq, E) block is lane-dense.
    @pl.when(jnp.logical_and(h == nh - 1, ki == nk - 1))
    def _():
        o_ref[0] += bo_ref[...]


def dilated_attention(x, wq, wk, wv, wo, bo, *, num_heads: int, dilation: int,
                      q_tile: int = 256, k_tile: int = 512, s_tile: int = 512):
    B, S, E = x.shape
    assert E % num_heads == 0
    D = E // num_heads
    assert D % 8 == 0, "head_dim must be a multiple of 8 for the TPU kernel"
    scale = 1.0 / math.sqrt(D)
    span = dilation * (S // dilation)
    rem = S % dilation

    vmem_limit = _vmem_limit()

    # --- Kernel 1: fused QKV projection (bf16 weights, scale folded into Q) --
    w_fused = jnp.concatenate([wq * scale, wk, wv], axis=1).astype(jnp.bfloat16)
    ts = _pick_tile(S, s_tile)
    tn = _pick_weight_tile(E, vmem_limit)
    qkv = _project_qkv(x, w_fused, ts, tn, vmem_limit)          # (B, S, 3E) bf16

    q = qkv[..., 0 * E:1 * E]
    k = qkv[..., 1 * E:2 * E]
    v = qkv[..., 2 * E:3 * E]

    # --- Structural dilation: strided K/V fast path ---------------------------
    # For S % dilation <= 1 every row's key set is exactly {0, d, 2d, ...};
    # gather those keys once and run dense (unmasked) flash over S/d keys.
    fast = rem <= 1
    if fast and dilation > 1:
        k = k[:, ::dilation]
        v = v[:, ::dilation]
    Sk = k.shape[1]

    def split_heads(t):
        # TODO(synk): fold this transpose into kernel 1's out_specs to save the
        # extra HBM round trip; kept as XLA ops on bf16 data for lowering safety.
        L = t.shape[1]
        return t.reshape(B, L, num_heads, D).transpose(0, 2, 1, 3)

    qh, kh, vh = split_heads(q), split_heads(k), split_heads(v)

    tq = _pick_tile(S, q_tile)
    tk = _pick_tile(Sk, k_tile)

    wo_b = wo.astype(jnp.bfloat16)            # full (E, E), resident once in VMEM
    bo2 = bo.reshape(1, E).astype(jnp.float32)

    kernel = functools.partial(_attn_kernel, span, dilation, not fast)
    grid = (B, S // tq, num_heads, Sk // tk)

    flops = 4 * B * num_heads * S * Sk * D + 2 * B * S * E * E
    bytes_accessed = (2 * B * S * E                      # Q (bf16)
                      + 4 * B * (S // tq) * Sk * E       # K+V re-streamed per q-tile
                      + 4 * B * S * E                    # output (f32)
                      + 2 * E * E + 4 * E)               # Wo (bf16) + bias

    return pl.pallas_call(
        kernel,
        out_shape=jax.ShapeDtypeStruct((B, S, E), jnp.float32),
        grid=grid,
        in_specs=[
            pl.BlockSpec((1, 1, tq, D), lambda b, qi, h, ki: (b, h, qi, 0)),   # Q
            pl.BlockSpec((1, 1, tk, D), lambda b, qi, h, ki: (b, h, ki, 0)),   # K
            pl.BlockSpec((1, 1, tk, D), lambda b, qi, h, ki: (b, h, ki, 0)),   # V
            pl.BlockSpec((E, E), lambda b, qi, h, ki: (0, 0)),                 # Wo
            pl.BlockSpec((1, E), lambda b, qi, h, ki: (0, 0)),                 # bias
        ],
        out_specs=pl.BlockSpec((1, tq, E), lambda b, qi, h, ki: (b, qi, 0)),
        scratch_shapes=[
            pltpu.VMEM((tq, 1), jnp.float32),    # running max m
            pltpu.VMEM((tq, 1), jnp.float32),    # running denominator l
            pltpu.VMEM((tq, D), jnp.float32),    # per-head context accumulator
        ],
        compiler_params=pltpu.CompilerParams(
            # batch/query-tile feed megacore (keep B*(S/tq) >= 2 and even on
            # v7x); head and key-tile are reductions into the same output block.
            dimension_semantics=("parallel", "parallel", "arbitrary", "arbitrary"),
            vmem_limit_bytes=vmem_limit),
        cost_estimate=pl.CostEstimate(
            flops=flops,
            transcendentals=B * num_heads * S * Sk,
            bytes_accessed=bytes_accessed),
    )(qh, kh, vh, wo_b, bo2)


# ---------------------------------------------------------------------------
# Reference: literal transcription of the PyTorch forward (eval mode).
# ---------------------------------------------------------------------------
def reference_forward(x, wq, wk, wv, wo, bo, *, num_heads: int, dilation: int):
    B, S, E = x.shape
    D = E // num_heads
    q = (x @ wq).reshape(B, S, num_heads, D).transpose(0, 2, 1, 3)
    k = (x @ wk).reshape(B, S, num_heads, D).transpose(0, 2, 1, 3)
    v = (x @ wv).reshape(B, S, num_heads, D).transpose(0, 2, 1, 3)
    out = jnp.zeros((B, S, E), jnp.float32)
    span = dilation * (S // dilation)
    for i in range(S):
        idx = jnp.arange(max(0, i - span), min(S, i + span + 1), dilation)
        if idx.size == 0:
            continue
        q_i = q[:, :, i:i + 1, :]                       # (B, H, 1, D)
        k_d = k[:, :, idx, :]                           # (B, H, L, D)
        v_d = v[:, :, idx, :]
        s = jnp.einsum('bhqd,bhld->bhql', q_i, k_d) / math.sqrt(D)
        w = jax.nn.softmax(s, axis=-1)
        ctx = jnp.einsum('bhql,bhld->bhqd', w, v_d)     # (B, H, 1, D)
        ctx = ctx.transpose(0, 2, 1, 3).reshape(B, 1, E)
        out = out.at[:, i:i + 1, :].set(ctx)
    return out @ wo + bo[None, None, :]


if __name__ == "__main__":
    master_key = jax.random.PRNGKey(0)

    def run_case(case_idx, B, S, E, H, dilation, **tiles):
        key = jax.random.fold_in(master_key, case_idx)
        kx, kq, kk, kv, ko, kb = jax.random.split(key, 6)
        x = jax.random.normal(kx, (B, S, E), jnp.float32)
        wq = jax.random.normal(kq, (E, E), jnp.float32) * 0.1
        wk = jax.random.normal(kk, (E, E), jnp.float32) * 0.1
        wv = jax.random.normal(kv, (E, E), jnp.float32) * 0.1
        wo = jax.random.normal(ko, (E, E), jnp.float32) * 0.1
        bo = jax.random.normal(kb, (E,), jnp.float32) * 0.1

        out = dilated_attention(x, wq, wk, wv, wo, bo,
                                num_heads=H, dilation=dilation, **tiles)
        out = jax.block_until_ready(out)

        ref = reference_forward(x, wq, wk, wv, wo, bo,
                                num_heads=H, dilation=dilation)
        assert out.shape == (B, S, E)
        err = float(jnp.max(jnp.abs(out - ref)))
        # bf16 MXU inputs with f32 accumulation: ~1e-2-scale tolerance.
        # Real bugs (wrong mask / softmax / projection) give O(0.3+) errors.
        assert jnp.allclose(out, ref, atol=3e-2, rtol=3e-2), err

    # Masked path (S % d == 2), single tiles, ragged tail rows (lo > 0).
    run_case(0, B=2, S=8, E=32, H=4, dilation=3)
    # Masked path with forced 2x2 query/key tiles: cross-tile online softmax,
    # cross-tile mask generation, cross-head/key-tile output accumulation.
    run_case(1, B=2, S=32, E=32, H=4, dilation=6,
             q_tile=16, k_tile=16, s_tile=16)
    # Strided fast path (S % d == 0): dense flash over the d-strided keys.
    run_case(2, B=2, S=32, E=32, H=4, dilation=4, q_tile=16)
    # dilation > S (span == 0): every row attends only to itself.
    run_case(3, B=1, S=4, E=32, H=4, dilation=5)

    print("KERNEL_OK")
</pallas_src>

<mosaic_0001>
module attributes {stable_mosaic.version = 11 : i64} {
  func.func @_qkv_kernel(%arg0: i32, %arg1: i32, %arg2: i32, %arg3: memref<1x8x32xf32, #tpu.memory_space<vmem>>, %arg4: memref<32x96xbf16, #tpu.memory_space<vmem>>, %arg5: memref<1x8x96xbf16, #tpu.memory_space<vmem>>) attributes {dimension_semantics = [#tpu.dimension_semantics<parallel>, #tpu.dimension_semantics<parallel>, #tpu.dimension_semantics<parallel>], iteration_bounds = array<i64: 1, 2, 1>, scalar_prefetch = 0 : i64, scratch_operands = 0 : i64, tpu.core_type = #tpu.core_type<tc>, window_params = [{transform_indices = @transform_0, window_bounds = array<i64: 1, 8, 32>}, {transform_indices = @transform_1, window_bounds = array<i64: 32, 96>}, {transform_indices = @transform_2, window_bounds = array<i64: 1, 8, 96>}]} {
    %c0 = arith.constant 0 : index
    %c0_0 = arith.constant 0 : index
    %c0_1 = arith.constant 0 : index
    %0 = vector.load %arg3[%c0, %c0_0, %c0_1] : memref<1x8x32xf32, #tpu.memory_space<vmem>>, vector<1x8x32xf32>
    %1 = vector.shape_cast %0 : vector<1x8x32xf32> to vector<8x32xf32>
    %2 = arith.truncf %1 : vector<8x32xf32> to vector<8x32xbf16>
    %c0_2 = arith.constant 0 : index
    %c0_3 = arith.constant 0 : index
    %3 = vector.load %arg4[%c0_2, %c0_3] : memref<32x96xbf16, #tpu.memory_space<vmem>>, vector<32x96xbf16>
    %cst = arith.constant dense<0.000000e+00> : vector<8x96xf32>
    %4 = tpu.matmul %2, %3, %cst {dimension_numbers = #tpu.dot_dimension_numbers<[1], [0], [0], [1], [0, 0, 1, 1], [], []>} : vector<8x32xbf16>, vector<32x96xbf16>, vector<8x96xf32> -> vector<8x96xf32>
    %5 = arith.truncf %4 : vector<8x96xf32> to vector<8x96xbf16>
    %c0_4 = arith.constant 0 : index
    %c0_5 = arith.constant 0 : index
    %c0_6 = arith.constant 0 : index
    %6 = vector.load %arg5[%c0_4, %c0_5, %c0_6] : memref<1x8x96xbf16, #tpu.memory_space<vmem>>, vector<1x8x96xbf16>
    %7 = vector.shape_cast %6 : vector<1x8x96xbf16> to vector<8x96xbf16>
    %8 = vector.shape_cast %5 : vector<8x96xbf16> to vector<1x8x96xbf16>
    tpu.vector_store %arg5[%c0_4, %c0_5, %c0_6], %8 {strides = array<i32>} : memref<1x8x96xbf16, #tpu.memory_space<vmem>>, vector<1x8x96xbf16>,
    return
  }
  func.func @transform_0(%arg0: i32, %arg1: i32, %arg2: i32) -> (i32, i32, i32) {
    %c0_i32 = arith.constant 0 : i32
    %c0_i32_0 = arith.constant 0 : i32
    return %arg1, %arg2, %c0_i32 : i32, i32, i32
  }
  func.func @transform_1(%arg0: i32, %arg1: i32, %arg2: i32) -> (i32, i32) {
    %c0_i32 = arith.constant 0 : i32
    %c0_i32_0 = arith.constant 0 : i32
    return %c0_i32, %arg0 : i32, i32
  }
  func.func @transform_2(%arg0: i32, %arg1: i32, %arg2: i32) -> (i32, i32, i32) {
    %c0_i32 = arith.constant 0 : i32
    return %arg1, %arg2, %arg0 : i32, i32, i32
  }
}

</mosaic_0001>

<bundles_post_ra>
// kernel: tpu_custom_call.1
= control target key start
LH: loop header
LB: loop body
LE: loop exit
PB: predicated region body
PF: predicated region fallthrough
CT: control target
= control target key end

     0   :  { %7 = vsyncpa [#allocation3], 0  ;;  %s876_s0 = inlined_call_operand.hbm [shape: f32[2,8,32], index: 0, kind: input, shape index: {}]   ;;  %s877_s1 = inlined_call_operand.hbm [shape: bf16[32,96], index: 1, kind: input, shape index: {}]   ;;  %s878_s2 = inlined_call_operand.hbm [shape: bf16[2,8,96], index: 2, kind: output, shape index: {}]  }
   0x1   :  { %9 = vsyncpa [#allocation3 + $0x1], 0 }
   0x2   :  { %10 = vsyncpa [#allocation6], 0 }
   0x3   :  { %11 = vsyncpa [#allocation4], 0 }
   0x4   :  { %13 = vsyncpa [#allocation4 + $0x1], 0  ;;  %s661_s9 = smov 0   ;;  %s663_s10 = smov 0  }
   0x5   :  { %s665_s11 = smov 0   ;;  %s667_s12 = smov 0  }
   0x6   :  { %s669_s13 = smov 0   ;;  %s671_s14 = smov 0  }
   0x7 LB: > { %s385_s15 = sadd.s32 4294967295, %s637_s14   ;;  %s386_s16 = sadd.s32 4294967294, %s637_s14   ;;  %s637_s14 = sphi %s671_s14, %s19_s14   ;;  %s633_s13 = sphi %s669_s13, %s902_s13   ;;  %s629_s12 = sphi %s667_s12, %s901_s12   ;;  %s625_s11 = sphi %s665_s11, %s900_s11   ;;  %s621_s10 = sphi %s663_s10, %s899_s10   ;;  %s617_s9 = sphi %s661_s9, %s898_s9  }
   0x8   : > { %p60_p0 = scmp.ne.s32.totalorder %s621_s10, %s617_s9  ;;  %p695_p1 = scmp.eq.s32.totalorder %s385_s15, 0 }
   0x9   : > { %p699_p2 = scmp.eq.s32.totalorder %s385_s15, 1  ;;  %p120_p3 = scmp.eq.s32.totalorder %s386_s16, 1 }
   0xa   : > { %s883_s17 = scalar_select %p695_p1, 1, 0 }
   0xb   : > { %s884_s18 = scalar_select %p699_p2, 1, 0 }
   0xc   : > { %p705_p4 = por %p695_p1, %p60_p0  ;;  %p387_p5 = scmp.ge.s32.totalorder %s637_s14, 1 }
   0xd   : > { %p710_p6 = por %p120_p3, %p60_p0  ;;  %p127_p7 = scmp.lt.s32.totalorder %s637_s14, 3 }
   0xe   : > { %s885_s19 = scalar_select %p705_p4, 1, 0 }
   0xf   : > { %s886_s20 = scalar_select %p710_p6, 1, 0 }
  0x10   : > { %p715_p8 = pnand %p387_p5, %p127_p7  ;;  %s639_s22 = smov [#allocation5]  }
  0x11   : > { %s141_s23 = sshll.u32 %s639_s22, 4  ;;  %s34_s25 = sadd.s32 1, %s633_s13  ;;  %s142_s23 = int_to_ptr.vmem [resolvable:$true] %s141_s23 }
  0x12   : > { %s887_s21 = scalar_select %p715_p8, 1, 0 }
  0x13   : > { %p422_p9 = pneg %p715_p8  ;;  %s493_s28 = scalar_lea.hbm %s877_s1, 256 }
  0x14   : > { %p494_p12 = scmp.ne.s32.totalorder %s877_s1, %s493_s28  ;;  %p500_p5 = scmp.lt.u32.totalorder %s493_s28, %s877_s1 }
  0x15   : > { %p724_p11 = pnand %p422_p9, %p695_p1 }
  0x17   : > { %p495_p13 = pneg %p724_p11 }
  0x19   : > { %p496_p0 = pnand %p495_p13, %p494_p12 }
  0x1b   : > { %p497_p3 = pneg %p496_p0 }
  0x1d   : > { %p502_p7 = pnand %p500_p5, %p497_p3 }
  0x1f   : > { %505 = shalt.err (!%p502_p7)
}
  0x20   : > { %s506_s5 = scalar_lea.vmem %s142_s23, 256  ;;  %p514_p1 = scmp.lt.s32.totalorder %s142_s23, %s142_s23 }
  0x21   : > { %p507_p9 = scmp.ne.s32.totalorder %s142_s23, %s506_s5  ;;  %p515_p4 = scmp.lt.s32.totalorder %s506_s5, %s506_s5 }
  0x23   : > { %p509_p10 = pnand %p507_p9, %p495_p13  ;;  %p516_p8 = por %p515_p4, %p514_p1 }
  0x25   : > { %p510_p6 = pneg %p509_p10 }
  0x27   : > { %p517_p2 = pnand %p516_p8, %p510_p6 }
  0x29   : > { %520 = shalt.err (!%p517_p2)
}
  0x2a   : > { %s640_s6 = smov 64   ;;  %s641_s7 = smov 4  }
  0x2b   : > { %425 = dma.hbm_to_vmem [thread:$0]  (!%p724_p11), %s877_s1, 256, %s142_s23, [#allocation6], %s640_s6, %s640_s6, %s641_s7  }
  0x2c   : > { %p36_p1 = scmp.ge.s32.totalorder %s34_s25, 2  ;;  %s47_s16 = sadd.s32 1, %s625_s11 }
  0x2d   : > { %p54_p2 = scmp.ne.s32.totalorder %s625_s11, %s621_s10  ;;  %p55_p4 = scmp.eq.s32.totalorder %s637_s14, 0 }
  0x2e   : > { %s904_s25 = smov (%p36_p1, %s34_s25), 0  ;;  %p890_p8 = scmp.ne.s32.totalorder %s884_s18, 0 }
  0x2f   : > { %p751_p6 = por %p55_p4, %p54_p2  ;;  %s42_s24 = ssub.s32 %s633_s13, %s904_s25 }
  0x30   : > { %p757_p10 = por %p890_p8, %p54_p2  ;;  %p435_p12 = scmp.lt.s32.totalorder %s637_s14, 2 }
  0x31   : > { %p45_p11 = scmp.eq.s32.totalorder %s42_s24, 0  ;;  %s155_s23 = sand.u32 1, %s625_s11  }
  0x32   : > { %s390_s27 = sshll.u32 %s155_s23, 3  ;;  %s391_s29 = sshll.u32 %s633_s13, 7 }
  0x33   : > { %s766_s28 = scalar_select %p45_p11, %s625_s11, %s47_s16  }
  0x34   : > { %s772_s4 = scalar_lea.hbm %s876_s0, %s391_s29  ;;  %s159_s18 = scalar_lea.vmem [#allocation2], %s390_s27 }
  0x35   : > { %s167_s5 = sshll.u32 %s159_s18, 4  ;;  %p778_p13 = pnand %p435_p12, %p751_p6  ;;  %s774_s5 = int_to_ptr.vmem [resolvable:$true] %s167_s5 }
  0x36   : > { %s156_s7 = scalar_lea.sflag [#allocation3], %s155_s23  ;;  %s521_s8 = scalar_lea.hbm %s772_s4, 128 }
  0x37   : > { %p522_p0 = scmp.ne.s32.totalorder %s772_s4, %s521_s8  ;;  %p523_p3 = pneg %p778_p13 }
  0x38   : > { %s526_s24 = scalar_lea.hbm %s876_s0, 256  ;;  %p527_p9 = scmp.lt.u32.totalorder %s772_s4, %s876_s0 }
  0x39   : > { %p524_p5 = pnand %p523_p3, %p522_p0  ;;  %p528_p1 = scmp.lt.u32.totalorder %s526_s24, %s521_s8 }
  0x3a   : > { %p530_p4 = scmp.lt.u32.totalorder %s521_s8, %s772_s4 }
  0x3b   : > { %p525_p7 = pneg %p524_p5  ;;  %p529_p2 = por %p528_p1, %p527_p9 }
  0x3d   : > { %p531_p6 = por %p530_p4, %p529_p2 }
  0x3f   : > { %p532_p8 = pnand %p531_p6, %p525_p7 }
  0x41   : > { %535 = shalt.err (!%p532_p8)
}
  0x42   : > { %s536_s23 = scalar_lea.vmem %s774_s5, 128  ;;  %s642_s29 = smov [#allocation2]  }
  0x43   : > { %p537_p12 = scmp.ne.s32.totalorder %s774_s5, %s536_s23  ;;  %s541_s30 = sshll.u32 %s642_s29, 4  ;;  %s542_s30 = int_to_ptr.vmem [resolvable:$false] %s541_s30 }
  0x44   : > { %s543_s3 = scalar_lea.vmem %s542_s30, 256  ;;  %p544_p5 = scmp.lt.s32.totalorder %s774_s5, %s542_s30 }
  0x45   : > { %p539_p11 = pnand %p537_p12, %p523_p3  ;;  %p545_p9 = scmp.lt.s32.totalorder %s543_s3, %s536_s23 }
  0x47   : > { %p540_p0 = pneg %p539_p11  ;;  %p546_p1 = por %p545_p9, %p544_p5 }
  0x49   : > { %p547_p2 = pnand %p546_p1, %p540_p0 }
  0x4b   : > { %550 = shalt.err (!%p547_p2)
}
  0x4c   : > { %429 = dma.hbm_to_vmem [thread:$0]  (!%p778_p13), %s772_s4, 128, %s774_s5, %s156_s7  }
  0x4d   : > { %p893_p7 = scmp.ne.s32.totalorder %s887_s21, 0 }
  0x4e   : > { %s810_s18 = sand.u32 (!%p893_p7), 1, %s621_s10   ;;  %p894_p3 = scmp.ne.s32.totalorder (!%p893_p7), %s885_s19, 0 }
  0x4f   : > { %176 = sbr.rel (%p893_p7) target bundleno = 327 (0x147), region = 28  ;;  %s393_s8 = sshll.u32 (!%p893_p7), %s810_s18, 3 }
  0x50   : > { %s179_s15 = scalar_lea.sflag (!%p893_p7), [#allocation3], %s810_s18  ;;  %s182_s16 = scalar_lea.vmem (!%p893_p7), [#allocation2], %s393_s8 }
  0x56   : > { %604 = dma.done.wait (%p894_p3), %s179_s15, 128  }
  0x57   : > { %606 = vsyncadd (%p894_p3), %s179_s15, 4294967168  ;;  %p895_p4 = scmp.ne.s32.totalorder %s883_s17, 0 }
  0x59   : > { %608 = dma.done.wait (%p895_p4), [#allocation6], 256  }
  0x5a   : > { %610 = vsyncadd (%p895_p4), [#allocation6], 4294967040  ;;  %v643_v0 = vmov 0.0   ;;  %vm644_vm0 = vmmov 0   ;;  %v491_v1 = vld [vmem:[#allocation5] sm:$0xff]   ;;  %v492_v2 = vld [vmem:[#allocation5 + $0x8] sm:$0xff]  }
  0x5b   : > { %406 = vmatprep.subr.bf16.mxu0 %v643_v0  ;;  %410 = vmatprep.mubr.msk.bf16.mxu0 %vm644_vm0, %v643_v0  ;;  %v208_v3 = vld [vmem:[%s182_s16] sm:$0xff]  ;;  %vm226_vm1 = vcmask 261120   ;;  %s395_s19 = sshll.u32 %s810_s18, 2  ;;  %s400_s17 = sshll.u32 %s629_s12, 6  ;;  %vm271_vm2 = vcmask 781312  }
  0x5c   : > { %407 = vmatpush3.bf16.msra.mxu0 %v491_v1  ;;  %v209_v4 = vpack.c.bf16 %v208_v3, %v208_v3  ;;  %s206_s21 = scalar_lea.vmem [#allocation7], %s395_s19  ;;  %s827_s7 = scalar_lea.hbm %s878_s2, %s400_s17 }
  0x5d   : > { %408 = vmatprep.subr.bf16.mxu0 %v643_v0  ;;  %s289_s4 = sshll.u32 %s206_s21, 4  ;;  %s274_s12 = scalar_lea.sflag [#allocation4], %s810_s18  ;;  %s829_s4 = int_to_ptr.vmem [resolvable:$true] %s289_s4 }
  0x5e   : > { %s551_s24 = scalar_lea.vmem %s829_s4, 64  ;;  %s645_s22 = smov [#allocation7]  }
  0x5f   : > { %p552_p13 = scmp.ne.s32.totalorder %s829_s4, %s551_s24  ;;  %s555_s27 = sshll.u32 %s645_s22, 4  ;;  %s556_s27 = int_to_ptr.vmem [resolvable:$false] %s555_s27 }
  0x60   : > { %409 = vmatpush3.bf16.msra.mxu0 %v492_v2  ;;  %s557_s23 = scalar_lea.vmem %s556_s27, 128  ;;  %p558_p12 = scmp.lt.s32.totalorder %s829_s4, %s556_s27 }
  0x61   : > { %p553_p6 = pnand %p552_p13, %p757_p10  ;;  %p559_p11 = scmp.lt.s32.totalorder %s557_s23, %s551_s24 }
  0x63   : > { %411 = vmatmul.mubr.msk.bf16.vlgmr.msra.gmra.mrb[0].mxu0 %vm226_vm1, %v209_v4  ;;  %p554_p8 = pneg %p553_p6  ;;  %p560_p0 = por %p559_p11, %p558_p12 }
  0x65   : > { %p561_p5 = pnand %p560_p0, %p554_p8 }
 0x136   : > { %v264_v5 = vpop.f32.mrb[0].mxu0 }
 0x137   : > { %v270_v6 = vpack.c.bf16 %v264_v5, %v264_v5  ;;  %v412_v7 = vpop.f32.mrb[1].mxu0 }
 0x138   : > { %v267_v8 = vpop.f32.mrb[2].mxu0 }
 0x139   : > { %v413_v9 = vpop.f32.mrb[3].mxu0  ;;  %272 = vst.msk [vmem:[%s206_s21] sm:$0xf] %vm271_vm2, %v270_v6 }
 0x13a   : > { %564 = shalt.err (!%p561_p5)
}
 0x13b   : > { %s565_s29 = scalar_lea.hbm %s827_s7, 64  ;;  %s569_s18 = scalar_lea.hbm %s878_s2, 128 }
 0x13c   : > { %p566_p9 = scmp.ne.s32.totalorder %s827_s7, %s565_s29  ;;  %p570_p7 = scmp.lt.u32.totalorder %s827_s7, %s878_s2 }
 0x13d   : > { %p571_p3 = scmp.lt.u32.totalorder %s569_s18, %s565_s29  ;;  %p573_p13 = scmp.lt.u32.totalorder %s565_s29, %s827_s7 }
 0x13e   : > { %p567_p1 = pnand %p566_p9, %p757_p10 }
 0x13f   : > { %p572_p4 = por %p571_p3, %p570_p7 }
 0x140   : > { %p568_p2 = pneg %p567_p1 }
 0x141   : > { %p574_p6 = por %p573_p13, %p572_p4 }
 0x143   : > { %p575_p8 = pnand %p574_p6, %p568_p2 }
 0x145   : > { %578 = shalt.err (!%p575_p8)
}
 0x146   : > { %420 = dma.vmem_to_hbm [thread:$0]  (%p757_p10), %s829_s4, 64, %s827_s7, %s274_s12  }
 0x147 PF: > { %s301_s16 = sand.u32 1, %s617_s9   ;;  %p896_p12 = scmp.ne.s32.totalorder %s886_s20, 0 }
 0x148   : > { %p897_p11 = scmp.ge.s32.totalorder %s637_s14, 2  ;;  %s302_s19 = scalar_lea.sflag [#allocation4], %s301_s16 }
 0x14a   : > { %p431_p0 = pnand %p897_p11, %p896_p12 }
 0x14c   : > { %612 = dma.done.wait (!%p431_p0), %s302_s19, 64  }
 0x14d   : > { %614 = vsyncadd (!%p431_p0), %s302_s19, 4294967232  ;;  %s19_s14 = sadd.s32 1, %s637_s14   ;;  %s898_s9 = smov %s621_s10 }
 0x14e   : > { %p16_p5 = scmp.ge.s32.totalorder %s19_s14, 4   ;;  %s899_s10 = smov %s625_s11 }
 0x14f   : > { %s900_s11 = smov %s766_s28  ;;  %s901_s12 = smov %s633_s13 }
 0x150   : > { %s902_s13 = smov %s904_s25  ;;  %18 = sbr.rel (!%p16_p5) target bundleno = 7 (0x7), region = 78 }
 0x157   :  { %307 = vsyncpa [#allocation3], 1 }
 0x158   :  { %309 = vsyncpa [#allocation3 + $0x1], 1 }
 0x159   :  { %310 = vsyncpa [#allocation6], 1 }
 0x15a   :  { %311 = vsyncpa [#allocation4], 1 }
 0x15b   :  { %313 = vsyncpa [#allocation4 + $0x1], 1 }

</bundles_post_ra>
